<compile_context>
chip_gen: v7x
topology: tpu7x:2x2x1
jax: 0.10.0
libtpu: 0.0.40
codegen_flags: <defaults>
</compile_context>

<pallas_src>
import functools

import jax
import jax.numpy as jnp
from jax.experimental import pallas as pl
from jax.experimental.pallas import tpu as pltpu


LN_EPS = 1e-5   # nn.LayerNorm default


def _round_up(n, m):
    return ((n + m - 1) // m) * m


def _cdiv(a, b):
    return (a + b - 1) // b


def _layer_norm(h, gamma, beta):
    """LayerNorm over the last dim (biased variance + eps), gamma folded into the scale.

    out = (h - mu) * rsqrt(var + eps) * gamma + beta
        = h * scale + (beta - mu * scale),  scale = gamma * rsqrt(var + eps)
    Single-pass mean / E[h^2] (var clamped at 0) instead of a second (h - mu)^2 pass.
    """
    mu = jnp.mean(h, axis=-1, keepdims=True)
    var = jnp.maximum(jnp.mean(h * h, axis=-1, keepdims=True) - mu * mu, 0.0)
    scale = gamma * jax.lax.rsqrt(var + LN_EPS)
    return h * scale + (beta - mu * scale)


def actor_kernel(x_ref,
                 w1_ref, p1_ref,
                 w2_ref, p2_ref,
                 w3_ref, b3_ref,
                 out_ref,
                 *, action_bound):
    # Load packed LayerNorm / bias params once (rows: [bias, gamma, beta]).
    p1 = p1_ref[...]
    b1, g1, be1 = p1[0:1, :], p1[1:2, :], p1[2:3, :]
    p2 = p2_ref[...]
    b2, g2, be2 = p2[0:1, :], p2[1:2, :], p2[2:3, :]
    b3 = b3_ref[...]

    # fc1 -> ln1 -> relu   (bf16 MXU operands, f32 accumulation, f32 elementwise)
    xb = x_ref[...].astype(jnp.bfloat16)
    h1 = jnp.dot(xb, w1_ref[...], preferred_element_type=jnp.float32) + b1
    h1 = jnp.maximum(_layer_norm(h1, g1, be1), 0.0)

    # fc2 -> ln2 -> relu
    h2 = jnp.dot(h1.astype(jnp.bfloat16), w2_ref[...],
                 preferred_element_type=jnp.float32) + b2
    h2 = jnp.maximum(_layer_norm(h2, g2, be2), 0.0)

    # fc3 -> tanh -> scale   (narrow, action_dim-wide store; Pallas masks the tail lanes)
    a = jnp.dot(h2.astype(jnp.bfloat16), w3_ref[...],
                preferred_element_type=jnp.float32) + b3
    out_ref[...] = (jnp.tanh(a) * action_bound).astype(out_ref.dtype)


def actor_forward(x, params, *, action_dim, action_bound=1.0,
                  block_rows=2048, min_grid_steps=2, out_dtype=jnp.float32):
    B, state_dim = x.shape
    h1 = params["w1"].shape[1]
    h2 = params["w2"].shape[1]
    assert params["w3"].shape[1] == action_dim

    # --- batch tiling -------------------------------------------------------
    # * block_rows clamped to a multiple of 8 (sublane constraint).
    # * tb picked to minimize tail waste: split B into the fewest equal-ish tiles
    #   that respect block_rows, then round the tile up to 8.
    # * keep >= min_grid_steps steps when there is enough work so the "parallel"
    #   batch axis can use both v7x TensorCores (harmless on v5e / v6e).
    # * no jnp.pad: grid = cdiv(B, tb); Pallas masks the ragged tail block.
    block_rows = max(8, (block_rows // 8) * 8)
    steps = _cdiv(B, block_rows)
    if B > 8 * min_grid_steps:
        steps = max(steps, min_grid_steps)
    tb = _round_up(_cdiv(B, steps), 8)
    grid = (_cdiv(B, tb),)

    resident = lambda shape: pl.BlockSpec(shape, lambda i: (0, 0))

    in_specs = [
        pl.BlockSpec((tb, state_dim), lambda i: (i, 0)),        # x tile
        resident((state_dim, h1)),  resident((3, h1)),          # W1, [b1; g1; be1]
        resident((h1, h2)),         resident((3, h2)),          # W2, [b2; g2; be2]
        resident((h2, action_dim)), resident((1, action_dim)),  # W3, b3 (narrow)
    ]
    out_specs = pl.BlockSpec((tb, action_dim), lambda i: (i, 0))

    # Raise scoped-VMEM only when a very large tb might exceed the v5e 16 MiB default
    # (double-buffered x/out tiles + f32 h1/h2 intermediates).
    out_bytes = jnp.dtype(out_dtype).itemsize
    est = 2 * tb * (state_dim * 4 + action_dim * out_bytes) + 4 * tb * (h1 + h2)
    cp_kwargs = dict(dimension_semantics=("parallel",))
    if est > 12 * 1024 * 1024:
        cp_kwargs["vmem_limit_bytes"] = int(min(2 * est, 100 * 1024 * 1024))

    return pl.pallas_call(
        functools.partial(actor_kernel, action_bound=action_bound),
        out_shape=jax.ShapeDtypeStruct((B, action_dim), out_dtype),
        grid=grid,
        in_specs=in_specs,
        out_specs=out_specs,
        compiler_params=pltpu.CompilerParams(**cp_kwargs),
    )(x, params["w1"], params["p1"], params["w2"], params["p2"],
      params["w3"], params["b3"])


def init_params(key, state_dim, action_dim, hidden_dims):
    """Deterministic init mirroring the PyTorch _initialize_weights().

    Weights are stored (in, out) so y = x @ W, cast once to bf16 (MXU operand dtype;
    accumulation is f32 — documented deviation from the fp32 torch numerics).
    LayerNorm/bias params are packed per hidden layer as rows [bias, gamma, beta] (f32).
    W3/b3 keep their natural action_dim width (narrow, masked-store output).
    """
    h1, h2 = hidden_dims
    k1, k2, k3, k4 = jax.random.split(key, 4)

    def xavier_uniform(k, fan_in, fan_out):
        limit = (6.0 / (fan_in + fan_out)) ** 0.5
        return jax.random.uniform(k, (fan_in, fan_out), jnp.float32, -limit, limit)

    def pack_ln(dim):
        # rows: [linear bias (zeros), LN gamma (ones), LN beta (zeros)]
        return jnp.stack([jnp.zeros((dim,), jnp.float32),
                          jnp.ones((dim,), jnp.float32),
                          jnp.zeros((dim,), jnp.float32)], axis=0)

    return {
        "w1": xavier_uniform(k1, state_dim, h1).astype(jnp.bfloat16),
        "p1": pack_ln(h1),
        "w2": xavier_uniform(k2, h1, h2).astype(jnp.bfloat16),
        "p2": pack_ln(h2),
        "w3": jax.random.uniform(k3, (h2, action_dim), jnp.float32,
                                 -0.003, 0.003).astype(jnp.bfloat16),
        "b3": jax.random.uniform(k4, (1, action_dim), jnp.float32, -0.003, 0.003),
    }


def actor_reference(x, params, *, action_dim, action_bound=1.0):
    """Pure-JAX reference (same bf16 matmul-operand / f32-accumulate recipe)."""
    p1, p2 = params["p1"], params["p2"]
    b1, g1, be1 = p1[0:1, :], p1[1:2, :], p1[2:3, :]
    b2, g2, be2 = p2[0:1, :], p2[1:2, :], p2[2:3, :]

    h1 = jnp.dot(x.astype(jnp.bfloat16), params["w1"],
                 preferred_element_type=jnp.float32) + b1
    h1 = jnp.maximum(_layer_norm(h1, g1, be1), 0.0)
    h2 = jnp.dot(h1.astype(jnp.bfloat16), params["w2"],
                 preferred_element_type=jnp.float32) + b2
    h2 = jnp.maximum(_layer_norm(h2, g2, be2), 0.0)
    a = jnp.dot(h2.astype(jnp.bfloat16), params["w3"],
                preferred_element_type=jnp.float32) + params["b3"]
    return jnp.tanh(a) * action_bound


if __name__ == "__main__":
    # Small shapes consistent with the actor MLP forward.
    state_dim, action_dim = 16, 4
    hidden_dims = [32, 32]
    action_bound = 1.0

    key = jax.random.PRNGKey(0)
    k_params, k_x1, k_x2 = jax.random.split(key, 3)
    params = init_params(k_params, state_dim, action_dim, hidden_dims)

    # Tiny batch: single (partial) grid step, no padding pass.
    x1 = jax.random.normal(k_x1, (4, state_dim), jnp.float32)
    out1 = jax.block_until_ready(
        actor_forward(x1, params, action_dim=action_dim, action_bound=action_bound))
    ref1 = actor_reference(x1, params, action_dim=action_dim, action_bound=action_bound)
    assert out1.shape == (4, action_dim), out1.shape
    assert jnp.allclose(out1, ref1, atol=1e-4, rtol=1e-4), (out1, ref1)

    # Larger ragged batch: exercises the multi-step "parallel" grid and the masked
    # tail block (100 rows, 2 tiles of 56 rows).
    x2 = jax.random.normal(k_x2, (100, state_dim), jnp.float32)
    out2 = jax.block_until_ready(
        actor_forward(x2, params, action_dim=action_dim, action_bound=action_bound,
                      block_rows=64))
    ref2 = actor_reference(x2, params, action_dim=action_dim, action_bound=action_bound)
    assert out2.shape == (100, action_dim), out2.shape
    assert jnp.allclose(out2, ref2, atol=1e-4, rtol=1e-4), (out2, ref2)

    print("KERNEL_OK")
</pallas_src>

<mosaic_0001>
module attributes {stable_mosaic.version = 11 : i64} {
  func.func @actor_kernel(%arg0: i32, %arg1: memref<8x16xf32, #tpu.memory_space<vmem>>, %arg2: memref<16x32xbf16, #tpu.memory_space<vmem>>, %arg3: memref<3x32xf32, #tpu.memory_space<vmem>>, %arg4: memref<32x32xbf16, #tpu.memory_space<vmem>>, %arg5: memref<3x32xf32, #tpu.memory_space<vmem>>, %arg6: memref<32x4xbf16, #tpu.memory_space<vmem>>, %arg7: memref<1x4xf32, #tpu.memory_space<vmem>>, %arg8: memref<8x4xf32, #tpu.memory_space<vmem>>) attributes {dimension_semantics = [#tpu.dimension_semantics<parallel>], iteration_bounds = array<i64: 1>, scalar_prefetch = 0 : i64, scratch_operands = 0 : i64, tpu.core_type = #tpu.core_type<tc>, window_params = [{transform_indices = @transform_0, window_bounds = array<i64: 8, 16>}, {pipeline_mode = #tpu.pipeline_mode<synchronous>, transform_indices = @transform_1, window_bounds = array<i64: 16, 32>}, {pipeline_mode = #tpu.pipeline_mode<synchronous>, transform_indices = @transform_2, window_bounds = array<i64: 3, 32>}, {pipeline_mode = #tpu.pipeline_mode<synchronous>, transform_indices = @transform_3, window_bounds = array<i64: 32, 32>}, {pipeline_mode = #tpu.pipeline_mode<synchronous>, transform_indices = @transform_4, window_bounds = array<i64: 3, 32>}, {pipeline_mode = #tpu.pipeline_mode<synchronous>, transform_indices = @transform_5, window_bounds = array<i64: 32, 4>}, {pipeline_mode = #tpu.pipeline_mode<synchronous>, transform_indices = @transform_6, window_bounds = array<i64: 1, 4>}, {transform_indices = @transform_7, window_bounds = array<i64: 8, 4>}]} {
    %c0 = arith.constant 0 : index
    %c0_0 = arith.constant 0 : index
    %0 = vector.load %arg3[%c0, %c0_0] : memref<3x32xf32, #tpu.memory_space<vmem>>, vector<3x32xf32>
    %1 = vector.extract_strided_slice %0 {offsets = [0, 0], sizes = [1, 32], strides = [1, 1]} : vector<3x32xf32> to vector<1x32xf32>
    %2 = vector.extract_strided_slice %0 {offsets = [1, 0], sizes = [1, 32], strides = [1, 1]} : vector<3x32xf32> to vector<1x32xf32>
    %3 = vector.extract_strided_slice %0 {offsets = [2, 0], sizes = [1, 32], strides = [1, 1]} : vector<3x32xf32> to vector<1x32xf32>
    %c0_1 = arith.constant 0 : index
    %c0_2 = arith.constant 0 : index
    %4 = vector.load %arg5[%c0_1, %c0_2] : memref<3x32xf32, #tpu.memory_space<vmem>>, vector<3x32xf32>
    %5 = vector.extract_strided_slice %4 {offsets = [0, 0], sizes = [1, 32], strides = [1, 1]} : vector<3x32xf32> to vector<1x32xf32>
    %6 = vector.extract_strided_slice %4 {offsets = [1, 0], sizes = [1, 32], strides = [1, 1]} : vector<3x32xf32> to vector<1x32xf32>
    %7 = vector.extract_strided_slice %4 {offsets = [2, 0], sizes = [1, 32], strides = [1, 1]} : vector<3x32xf32> to vector<1x32xf32>
    %c0_3 = arith.constant 0 : index
    %c0_4 = arith.constant 0 : index
    %8 = vector.load %arg7[%c0_3, %c0_4] : memref<1x4xf32, #tpu.memory_space<vmem>>, vector<1x4xf32>
    %c0_5 = arith.constant 0 : index
    %c0_6 = arith.constant 0 : index
    %9 = vector.load %arg1[%c0_5, %c0_6] : memref<8x16xf32, #tpu.memory_space<vmem>>, vector<8x16xf32>
    %10 = arith.truncf %9 : vector<8x16xf32> to vector<8x16xbf16>
    %c0_7 = arith.constant 0 : index
    %c0_8 = arith.constant 0 : index
    %11 = vector.load %arg2[%c0_7, %c0_8] : memref<16x32xbf16, #tpu.memory_space<vmem>>, vector<16x32xbf16>
    %cst = arith.constant dense<0.000000e+00> : vector<8x32xf32>
    %12 = tpu.matmul %10, %11, %cst {dimension_numbers = #tpu.dot_dimension_numbers<[1], [0], [0], [1], [0, 0, 1, 1], [], []>} : vector<8x16xbf16>, vector<16x32xbf16>, vector<8x32xf32> -> vector<8x32xf32>
    %13 = vector.broadcast %1 : vector<1x32xf32> to vector<8x32xf32>
    %14 = arith.addf %12, %13 : vector<8x32xf32>
    %cst_9 = arith.constant dense<0.000000e+00> : vector<8xf32>
    %15 = vector.multi_reduction <add>, %14, %cst_9 [1] : vector<8x32xf32> to vector<8xf32>
    %16 = vector.shape_cast %15 : vector<8xf32> to vector<8x1xf32>
    %cst_10 = arith.constant 3.200000e+01 : f32
    %17 = vector.broadcast %cst_10 : f32 to vector<8x1xf32>
    %18 = arith.divf %16, %17 : vector<8x1xf32>
    %19 = arith.mulf %14, %14 : vector<8x32xf32>
    %cst_11 = arith.constant dense<0.000000e+00> : vector<8xf32>
    %20 = vector.multi_reduction <add>, %19, %cst_11 [1] : vector<8x32xf32> to vector<8xf32>
    %21 = vector.shape_cast %20 : vector<8xf32> to vector<8x1xf32>
    %cst_12 = arith.constant 3.200000e+01 : f32
    %22 = vector.broadcast %cst_12 : f32 to vector<8x1xf32>
    %23 = arith.divf %21, %22 : vector<8x1xf32>
    %24 = arith.mulf %18, %18 : vector<8x1xf32>
    %25 = arith.subf %23, %24 : vector<8x1xf32>
    %cst_13 = arith.constant 0.000000e+00 : f32
    %26 = vector.broadcast %cst_13 : f32 to vector<8x1xf32>
    %27 = arith.maximumf %25, %26 : vector<8x1xf32>
    %cst_14 = arith.constant 9.99999974E-6 : f32
    %28 = vector.broadcast %cst_14 : f32 to vector<8x1xf32>
    %29 = arith.addf %27, %28 : vector<8x1xf32>
    %30 = math.rsqrt %29 : vector<8x1xf32>
    %31 = vector.broadcast %2 : vector<1x32xf32> to vector<8x32xf32>
    %32 = vector.broadcast %30 : vector<8x1xf32> to vector<8x32xf32>
    %33 = arith.mulf %31, %32 : vector<8x32xf32>
    %34 = arith.mulf %14, %33 : vector<8x32xf32>
    %35 = vector.broadcast %18 : vector<8x1xf32> to vector<8x32xf32>
    %36 = arith.mulf %35, %33 : vector<8x32xf32>
    %37 = vector.broadcast %3 : vector<1x32xf32> to vector<8x32xf32>
    %38 = arith.subf %37, %36 : vector<8x32xf32>
    %39 = arith.addf %34, %38 : vector<8x32xf32>
    %cst_15 = arith.constant 0.000000e+00 : f32
    %40 = vector.broadcast %cst_15 : f32 to vector<8x32xf32>
    %41 = arith.maximumf %39, %40 : vector<8x32xf32>
    %42 = arith.truncf %41 : vector<8x32xf32> to vector<8x32xbf16>
    %c0_16 = arith.constant 0 : index
    %c0_17 = arith.constant 0 : index
    %43 = vector.load %arg4[%c0_16, %c0_17] : memref<32x32xbf16, #tpu.memory_space<vmem>>, vector<32x32xbf16>
    %cst_18 = arith.constant dense<0.000000e+00> : vector<8x32xf32>
    %44 = tpu.matmul %42, %43, %cst_18 {dimension_numbers = #tpu.dot_dimension_numbers<[1], [0], [0], [1], [0, 0, 1, 1], [], []>} : vector<8x32xbf16>, vector<32x32xbf16>, vector<8x32xf32> -> vector<8x32xf32>
    %45 = vector.broadcast %5 : vector<1x32xf32> to vector<8x32xf32>
    %46 = arith.addf %44, %45 : vector<8x32xf32>
    %cst_19 = arith.constant dense<0.000000e+00> : vector<8xf32>
    %47 = vector.multi_reduction <add>, %46, %cst_19 [1] : vector<8x32xf32> to vector<8xf32>
    %48 = vector.shape_cast %47 : vector<8xf32> to vector<8x1xf32>
    %cst_20 = arith.constant 3.200000e+01 : f32
    %49 = vector.broadcast %cst_20 : f32 to vector<8x1xf32>
    %50 = arith.divf %48, %49 : vector<8x1xf32>
    %51 = arith.mulf %46, %46 : vector<8x32xf32>
    %cst_21 = arith.constant dense<0.000000e+00> : vector<8xf32>
    %52 = vector.multi_reduction <add>, %51, %cst_21 [1] : vector<8x32xf32> to vector<8xf32>
    %53 = vector.shape_cast %52 : vector<8xf32> to vector<8x1xf32>
    %cst_22 = arith.constant 3.200000e+01 : f32
    %54 = vector.broadcast %cst_22 : f32 to vector<8x1xf32>
    %55 = arith.divf %53, %54 : vector<8x1xf32>
    %56 = arith.mulf %50, %50 : vector<8x1xf32>
    %57 = arith.subf %55, %56 : vector<8x1xf32>
    %cst_23 = arith.constant 0.000000e+00 : f32
    %58 = vector.broadcast %cst_23 : f32 to vector<8x1xf32>
    %59 = arith.maximumf %57, %58 : vector<8x1xf32>
    %cst_24 = arith.constant 9.99999974E-6 : f32
    %60 = vector.broadcast %cst_24 : f32 to vector<8x1xf32>
    %61 = arith.addf %59, %60 : vector<8x1xf32>
    %62 = math.rsqrt %61 : vector<8x1xf32>
    %63 = vector.broadcast %6 : vector<1x32xf32> to vector<8x32xf32>
    %64 = vector.broadcast %62 : vector<8x1xf32> to vector<8x32xf32>
    %65 = arith.mulf %63, %64 : vector<8x32xf32>
    %66 = arith.mulf %46, %65 : vector<8x32xf32>
    %67 = vector.broadcast %50 : vector<8x1xf32> to vector<8x32xf32>
    %68 = arith.mulf %67, %65 : vector<8x32xf32>
    %69 = vector.broadcast %7 : vector<1x32xf32> to vector<8x32xf32>
    %70 = arith.subf %69, %68 : vector<8x32xf32>
    %71 = arith.addf %66, %70 : vector<8x32xf32>
    %cst_25 = arith.constant 0.000000e+00 : f32
    %72 = vector.broadcast %cst_25 : f32 to vector<8x32xf32>
    %73 = arith.maximumf %71, %72 : vector<8x32xf32>
    %74 = arith.truncf %73 : vector<8x32xf32> to vector<8x32xbf16>
    %c0_26 = arith.constant 0 : index
    %c0_27 = arith.constant 0 : index
    %75 = vector.load %arg6[%c0_26, %c0_27] : memref<32x4xbf16, #tpu.memory_space<vmem>>, vector<32x4xbf16>
    %cst_28 = arith.constant dense<0.000000e+00> : vector<8x4xf32>
    %76 = tpu.matmul %74, %75, %cst_28 {dimension_numbers = #tpu.dot_dimension_numbers<[1], [0], [0], [1], [0, 0, 1, 1], [], []>} : vector<8x32xbf16>, vector<32x4xbf16>, vector<8x4xf32> -> vector<8x4xf32>
    %77 = vector.broadcast %8 : vector<1x4xf32> to vector<8x4xf32>
    %78 = arith.addf %76, %77 : vector<8x4xf32>
    %79 = math.tanh %78 : vector<8x4xf32>
    %cst_29 = arith.constant 1.000000e+00 : f32
    %80 = vector.broadcast %cst_29 : f32 to vector<8x4xf32>
    %81 = arith.mulf %79, %80 : vector<8x4xf32>
    %c0_30 = arith.constant 0 : index
    %c0_31 = arith.constant 0 : index
    %82 = vector.load %arg8[%c0_30, %c0_31] : memref<8x4xf32, #tpu.memory_space<vmem>>, vector<8x4xf32>
    tpu.vector_store %arg8[%c0_30, %c0_31], %81 {strides = array<i32>} : memref<8x4xf32, #tpu.memory_space<vmem>>, vector<8x4xf32>,
    return
  }
  func.func @transform_0(%arg0: i32) -> (i32, i32) {
    %c0_i32 = arith.constant 0 : i32
    %c0_i32_0 = arith.constant 0 : i32
    return %arg0, %c0_i32 : i32, i32
  }
  func.func @transform_1(%arg0: i32) -> (i32, i32) {
    %c0_i32 = arith.constant 0 : i32
    %c0_i32_0 = arith.constant 0 : i32
    %c0_i32_1 = arith.constant 0 : i32
    return %c0_i32, %c0_i32_0 : i32, i32
  }
  func.func @transform_2(%arg0: i32) -> (i32, i32) {
    %c0_i32 = arith.constant 0 : i32
    %c0_i32_0 = arith.constant 0 : i32
    %c0_i32_1 = arith.constant 0 : i32
    return %c0_i32, %c0_i32_0 : i32, i32
  }
  func.func @transform_3(%arg0: i32) -> (i32, i32) {
    %c0_i32 = arith.constant 0 : i32
    %c0_i32_0 = arith.constant 0 : i32
    %c0_i32_1 = arith.constant 0 : i32
    return %c0_i32, %c0_i32_0 : i32, i32
  }
  func.func @transform_4(%arg0: i32) -> (i32, i32) {
    %c0_i32 = arith.constant 0 : i32
    %c0_i32_0 = arith.constant 0 : i32
    %c0_i32_1 = arith.constant 0 : i32
    return %c0_i32, %c0_i32_0 : i32, i32
  }
  func.func @transform_5(%arg0: i32) -> (i32, i32) {
    %c0_i32 = arith.constant 0 : i32
    %c0_i32_0 = arith.constant 0 : i32
    %c0_i32_1 = arith.constant 0 : i32
    return %c0_i32, %c0_i32_0 : i32, i32
  }
  func.func @transform_6(%arg0: i32) -> (i32, i32) {
    %c0_i32 = arith.constant 0 : i32
    %c0_i32_0 = arith.constant 0 : i32
    %c0_i32_1 = arith.constant 0 : i32
    return %c0_i32, %c0_i32_0 : i32, i32
  }
  func.func @transform_7(%arg0: i32) -> (i32, i32) {
    %c0_i32 = arith.constant 0 : i32
    %c0_i32_0 = arith.constant 0 : i32
    return %arg0, %c0_i32 : i32, i32
  }
}

</mosaic_0001>

<bundles_post_ra>
// kernel: tpu_custom_call.1
= control target key start
LH: loop header
LB: loop body
LE: loop exit
PB: predicated region body
PF: predicated region fallthrough
CT: control target
= control target key end

     0   :  { %12 = vsyncpa [#allocation3], 0  ;;  %s526_s0 = inlined_call_operand.vmem [shape: f32[4,16], index: 0, kind: input, shape index: {}]   ;;  %s527_s1 = inlined_call_operand.vmem [shape: bf16[16,32], index: 1, kind: input, shape index: {}]   ;;  %s528_s2 = inlined_call_operand.hbm [shape: f32[3,32], index: 2, kind: input, shape index: {}]   ;;  %s529_s3 = inlined_call_operand.vmem [shape: bf16[32,32], index: 3, kind: input, shape index: {}]   ;;  %s530_s4 = inlined_call_operand.vmem [shape: f32[3,32], index: 4, kind: input, shape index: {}]   ;;  %s531_s5 = inlined_call_operand.vmem [shape: bf16[32,4], index: 5, kind: input, shape index: {}]   ;;  %s532_s6 = inlined_call_operand.vmem [shape: f32[1,4], index: 6, kind: input, shape index: {}]   ;;  %s533_s7 = inlined_call_operand.hbm [shape: f32[4,4], index: 7, kind: output, shape index: {}]  }
   0x1   :  { %13 = vsyncpa [#allocation4], 0  ;;  %s413_s24 = smov [#allocation2]   ;;  %s365_s28 = scalar_lea.hbm %s528_s2, 64 }
   0x2   :  { %s24_s25 = sshll.u32 %s413_s24, 4  ;;  %p366_p0 = scmp.ne.s32.totalorder %s528_s2, %s365_s28  ;;  %s25_s25 = int_to_ptr.vmem [resolvable:$true] %s24_s25 }
   0x3   :  { %p369_p1 = scmp.lt.u32.totalorder %s365_s28, %s528_s2 }
   0x5   :  { %p371_p2 = pnand %p369_p1, %p366_p0 }
   0x7   :  { %374 = shalt.err (!%p371_p2)
}
   0x8   :  { %s375_s10 = scalar_lea.vmem %s25_s25, 64  ;;  %p380_p4 = scmp.lt.s32.totalorder %s25_s25, %s25_s25 }
   0x9   :  { %p376_p3 = scmp.ne.s32.totalorder %s25_s25, %s375_s10  ;;  %p381_p5 = scmp.lt.s32.totalorder %s375_s10, %s375_s10 }
   0xb   :  { %p382_p6 = por %p381_p5, %p380_p4 }
   0xd   :  { %p383_p7 = pnand %p382_p6, %p376_p3 }
   0xf   :  { %386 = shalt.err (!%p383_p7)
}
  0x10   :  { %27 = dma.hbm_to_vmem [thread:$0]  %s528_s2, 64, %s25_s25, [#allocation3]  }
  0x11   :  { %409 = dma.done.wait [#allocation3], 64  }
  0x12   :  { %410 = vsyncadd [#allocation3], 4294967232  ;;  %v414_v0 = vmov 0.0   ;;  %vm415_vm0 = vmmov 0   ;;  %v354_v1 = vld [vmem:[%s527_s1] sm:$0xff]   ;;  %vm57_vm1 = vcmask 130048   ;;  %v47_v4 = vlaneseq }
  0x13   :  { %326 = vmatprep.subr.bf16.mxu0 %v414_v0  ;;  %328 = vmatprep.mubr.msk.bf16.mxu0 %vm415_vm0, %v414_v0  ;;  %v43_v2 = vld [vmem:[%s526_s0] sm:$0xff]  ;;  %vm101_vm2 = vcmask 261120   ;;  %v356_v18 = vld [vmem:[%s529_s3 + $0x8] sm:$0xff]   ;;  %vm290_vm3 = vcmask 31744  }
  0x14   :  { %332 = vmatprep.subr.bf16.mxu1 %v414_v0  ;;  %336 = vmatprep.mubr.msk.bf16.mxu1 %vm415_vm0, %v414_v0  ;;  %v44_v3 = vpack.c.bf16 %v43_v2, %v43_v2  ;;  %v483_v5 = vshrl.u32 %v47_v4, 7  ;;  %v40_v7 = vld [vmem:[#allocation2] sm:$0x7]  ;;  %v358_v50 = vld [vmem:[%s531_s5 + $0x8] sm:$0xff]  }
  0x15   :  { %327 = vmatpush3.bf16.msra.mxu0 %v354_v1  ;;  %v355_v17 = vld [vmem:[%s529_s3] sm:$0xff]  }
  0x16   :  { %340 = vmatprep.subr.bf16.mxu0 %v414_v0  ;;  %v49_v6 = vsub.s32 0, %v483_v5  ;;  %333 = vmatpush3.bf16.msra.mxu1 %v355_v17  ;;  %v119_v27 = vsub.s32 1, %v483_v5  ;;  %v126_v29 = vsub.s32 2, %v483_v5  ;;  %v41_v39 = vld [vmem:[%s530_s4] sm:$0x7] }
  0x17   :  { %334 = vmatprep.subr.bf16.mxu1 %v414_v0  ;;  %v357_v49 = vld [vmem:[%s531_s5] sm:$0xff]  }
  0x18   :  { %329 = vmatmul.mubr.msk.bf16.vlgmr.msra.gmra.mrb[0].mxu0 %vm57_vm1, %v44_v3  ;;  %v50_v8 = vrot.slane %v40_v7, %v49_v6  ;;  %v120_v28 = vrot.slane %v40_v7, %v119_v27  ;;  %v127_v31 = vrot.slane %v40_v7, %v126_v29  ;;  %v139_v40 = vrot.slane %v41_v39, %v49_v6  ;;  %v314_v5 = vld [vmem:[%s532_s6] ss:$0 sm:$0xff] }
  0x19   :  { %344 = vmatprep.mubr.msk.bf16.mxu0 %vm415_vm0, %v414_v0  ;;  %341 = vmatpush3.bf16.msra.mxu0 %v357_v49  ;;  %v212_v59 = vrot.slane %v41_v39, %v119_v27  ;;  %v219_v61 = vrot.slane %v41_v39, %v126_v29 }
  0x1a   :  { %335 = vmatpush3.bf16.msra.mxu1 %v356_v18  ;;  %342 = vmatprep.subr.bf16.mxu0 %v414_v0 }
  0x1d   :  { %343 = vmatpush3.bf16.msra.mxu0 %v358_v50 }
  0xeb   :  { %v95_v9 = vpop.f32.mrb[0].mxu0 }
  0xec   :  { %v96_v10 = vadd.f32 %v95_v9, %v50_v8  ;;  %v330_v11 = vpop.f32.mrb[1].mxu0 }
  0xed   :  { %v98_v12 = vpop.f32.mrb[2].mxu0 }
  0xee   :  { %v331_v13 = vpop.f32.mrb[3].mxu0  ;;  %v102_v14 = vsel %vm101_vm2, %v96_v10, 0.0  ;;  %v107_v15 = vmul.f32 %v96_v10, %v96_v10 }
  0xef   :  { %103 = vadd.xlane.f32.xlu0 %v102_v14 }
  0xf0   :  { %v108_v16 = vsel %vm101_vm2, %v107_v15, 0.0 }
  0xf3   :  { %109 = vadd.xlane.f32.xlu0 %v108_v16 }
 0x17c   :  { %v104_v19 = vpop.xlane.xlu0 %103 }
 0x17d   :  { %v106_v20 = vmul.f32 0.03125, %v104_v19 }
 0x17f   :  { %v112_v22 = vmul.f32 %v106_v20, %v106_v20 }
 0x180   :  { %v110_v21 = vpop.xlane.xlu0 %109 }
 0x181   :  { %v111_v23 = vmul.f32 0.03125, %v110_v21 }
 0x183   :  { %v113_v24 = vsub.f32 %v111_v23, %v112_v22 }
 0x185   :  { %v114_v25 = vmax.f32 %v113_v24, 0.0 }
 0x187   :  { %v115_v26 = vadd.f32 1e-05, %v114_v25 }
 0x189   :  { %359 = vrsqrt.f32 %v115_v26 }
 0x193   :  { %v360_v30 = vpop.eup %359 }
 0x194   :  { %v121_v32 = vmul.f32 %v360_v30, %v120_v28 }
 0x196   :  { %v123_v33 = vmul.f32 %v121_v32, %v106_v20  ;;  %v122_v34 = vmul.f32 %v121_v32, %v96_v10 }
 0x198   :  { %v128_v35 = vsub.f32 %v127_v31, %v123_v33 }
 0x19a   :  { %v129_v36 = vadd.f32 %v128_v35, %v122_v34 }
 0x19c   :  { %v130_v37 = vmax.f32 %v129_v36, 0.0 }
 0x19e   :  { %v131_v38 = vpack.c.bf16 %v130_v37, %v130_v37 }
 0x1a0   :  { %337 = vmatmul.mubr.msk.bf16.vlgmr.msra.gmra.mrb[0].mxu1 %vm101_vm2, %v131_v38 }
 0x273   :  { %v189_v41 = vpop.f32.mrb[0].mxu1 }
 0x274   :  { %v190_v42 = vadd.f32 %v189_v41, %v139_v40  ;;  %v338_v43 = vpop.f32.mrb[1].mxu1 }
 0x275   :  { %v192_v44 = vpop.f32.mrb[2].mxu1 }
 0x276   :  { %v339_v45 = vpop.f32.mrb[3].mxu1  ;;  %v195_v46 = vsel %vm101_vm2, %v190_v42, 0.0  ;;  %v199_v47 = vmul.f32 %v190_v42, %v190_v42 }
 0x277   :  { %196 = vadd.xlane.f32.xlu1 %v195_v46 }
 0x278   :  { %v200_v48 = vsel %vm101_vm2, %v199_v47, 0.0 }
 0x27b   :  { %201 = vadd.xlane.f32.xlu1 %v200_v48 }
 0x304   :  { %v197_v51 = vpop.xlane.xlu1 %196 }
 0x305   :  { %v198_v52 = vmul.f32 0.03125, %v197_v51 }
 0x307   :  { %v204_v54 = vmul.f32 %v198_v52, %v198_v52 }
 0x308   :  { %v202_v53 = vpop.xlane.xlu1 %201 }
 0x309   :  { %v203_v55 = vmul.f32 0.03125, %v202_v53 }
 0x30b   :  { %v205_v56 = vsub.f32 %v203_v55, %v204_v54 }
 0x30d   :  { %v206_v57 = vmax.f32 %v205_v56, 0.0 }
 0x30f   :  { %v207_v58 = vadd.f32 1e-05, %v206_v57 }
 0x311   :  { %361 = vrsqrt.f32 %v207_v58 }
 0x31b   :  { %v362_v60 = vpop.eup %361 }
 0x31c   :  { %v213_v62 = vmul.f32 %v362_v60, %v212_v59 }
 0x31e   :  { %v215_v63 = vmul.f32 %v213_v62, %v198_v52  ;;  %v214_v1 = vmul.f32 %v213_v62, %v190_v42 }
 0x320   :  { %v220_v2 = vsub.f32 %v219_v61, %v215_v63 }
 0x322   :  { %v221_v3 = vadd.f32 %v220_v2, %v214_v1 }
 0x324   :  { %v222_v4 = vmax.f32 %v221_v3, 0.0 }
 0x326   :  { %v223_v0 = vpack.c.bf16 %v222_v4, %v222_v4 }
 0x328   :  { %345 = vmatmul.mubr.msk.bf16.vlgmr.msra.gmra.mrb[4].mxu0 %vm101_vm2, %v223_v0 }
 0x3fb   :  { %v283_v6 = vpop.f32.mrb[4].mxu0 }
 0x3fc   :  { %v284_v7 = vadd.f32 %v314_v5, %v283_v6  ;;  %v346_v8 = vpop.f32.mrb[5].mxu0 }
 0x3fd   :  { %v286_v9 = vpop.f32.mrb[6].mxu0 }
 0x3fe   :  { %363 = vtanh.f32 %v284_v7  ;;  %v347_v10 = vpop.f32.mrb[7].mxu0 }
 0x408   :  { %v364_v11 = vpop.eup %363 }
 0x409   :  { %291 = vst.msk [vmem:[#allocation5] sm:$0xff] %vm290_vm3, %v364_v11 }
 0x40a   :  { %296 = vsyncadd [#allocation4], 64  ;;  %s416_s23 = smov [#allocation5]  }
 0x40b   :  { %s297_s24 = sshll.u32 %s416_s23, 4  ;;  %s298_s24 = int_to_ptr.vmem [resolvable:$true] %s297_s24 }
 0x40c   :  { %s387_s25 = scalar_lea.vmem %s298_s24, 64  ;;  %s391_s26 = scalar_lea.vmem %s298_s24, 128 }
 0x40d   :  { %p388_p8 = scmp.ne.s32.totalorder %s298_s24, %s387_s25  ;;  %p392_p9 = scmp.lt.s32.totalorder %s298_s24, %s298_s24 }
 0x40e   :  { %p393_p10 = scmp.lt.s32.totalorder %s391_s26, %s387_s25 }
 0x410   :  { %p394_p11 = por %p393_p10, %p392_p9 }
 0x412   :  { %p395_p12 = pnand %p394_p11, %p388_p8 }
 0x414   :  { %398 = shalt.err (!%p395_p12)
}
 0x415   :  { %s399_s28 = scalar_lea.hbm %s533_s7, 64 }
 0x416   :  { %p400_p13 = scmp.ne.s32.totalorder %s533_s7, %s399_s28  ;;  %p403_p0 = scmp.lt.u32.totalorder %s399_s28, %s533_s7 }
 0x418   :  { %p405_p1 = pnand %p403_p0, %p400_p13 }
 0x41a   :  { %408 = shalt.err (!%p405_p1)
}
 0x41b   :  { %s417_s10 = smov 64   ;;  %s418_s11 = smov 4  }
 0x41c   :  { %303 = dma.vmem_to_hbm [thread:$0]  %s298_s24, 64, %s533_s7, [#allocation4], %s417_s10, %s417_s10, %s418_s11  }
 0x41d   :  { %411 = dma.done.wait [#allocation4], 128  }
 0x41e   :  { %412 = vsyncadd [#allocation4], 4294967168 }
 0x41f   :  { %307 = vsyncpa [#allocation3], 1 }
 0x420   :  { %308 = vsyncpa [#allocation4], 1 }

</bundles_post_ra>
